<compile_context>
chip_gen: v6e
topology: v6e:2x2x1
jax: 0.10.0
libtpu: 0.0.40
codegen_flags: <defaults>
</compile_context>

<pallas_src>
import functools

import jax
import jax.numpy as jnp
from jax.experimental import pallas as pl
from jax.experimental.pallas import tpu as pltpu

WNORM_EPS = 1e-12
LANE = 128


def _round_up(x, m):
    return ((x + m - 1) // m) * m


# --------------------------- positional embedding (glue) ---------------------
def get_embedder(multires, input_dims=3):
    """Standard NeRF embedder [x, sin(2^l x), cos(2^l x)] — tiny elementwise JAX glue."""
    def embed(x):
        outs = [x]
        for l in range(multires):
            freq = 2.0 ** l
            outs.append(jnp.sin(x * freq))
            outs.append(jnp.cos(x * freq))
        return jnp.concatenate(outs, axis=-1)
    input_ch = input_dims * (1 + 2 * multires)
    return embed, input_ch


# ------------------------------ fused MLP kernel -----------------------------
def _make_render_kernel(num_layers, d_in, d_in_pad):
    """Kernel: concat inputs -> (Linear + ReLU) * (L-1) -> Linear -> tanh, all in VMEM."""
    def kernel(*refs):
        pts_ref, vd_ref, nrm_ref, feat_ref = refs[:4]
        o_ref = refs[-1]
        wb = refs[4:-1]                 # (w0, b0, w1, b1, ..., wL-1, bL-1)

        # In-register concat + zero-pad to a lane-dense (tile, 128) activation;
        # the padded input slab never exists in HBM.
        h = jnp.concatenate(
            [pts_ref[...], vd_ref[...], nrm_ref[...], feat_ref[...]], axis=-1)
        lane_pad = d_in_pad - d_in
        if lane_pad > 0:
            h = jnp.concatenate(
                [h, jnp.zeros((h.shape[0], lane_pad), h.dtype)], axis=-1)

        for l in range(num_layers):
            w = wb[2 * l][...]
            b = wb[2 * l + 1][...]
            h = jnp.dot(h, w, preferred_element_type=jnp.float32) + b
            if l < num_layers - 1:
                h = jnp.maximum(h, 0.0)        # ReLU
        o_ref[...] = jnp.tanh(h)               # final tanh, stored as (tile, 3)
    return kernel


def _fold_weight_norm(params, dims_pad):
    """w = g * v / ||v||  (dim=0 norm), computed once per forward (with eps); then
    zero-pad each layer to its padded (k_in_pad, k_out_pad) shape (lane-dense hiddens)."""
    folded = []
    for l, p in enumerate(params):
        v, g, b = p['v'], p['g'], p['b']
        w = g * v * jax.lax.rsqrt(jnp.sum(v * v, axis=0, keepdims=True) + WNORM_EPS)
        kin_pad, kout_pad = dims_pad[l], dims_pad[l + 1]
        w = jnp.pad(w, ((0, kin_pad - w.shape[0]), (0, kout_pad - w.shape[1])))
        b = jnp.pad(b, ((0, 0), (0, kout_pad - b.shape[1])))
        folded.append((w, b))
    return folded


# ------------------------------ forward wrapper ------------------------------
def rendering_forward(params, points, normals, view_dirs, feature_vectors,
                      *, multires_view=0, interpret=False):
    """RenderingNetwork.forward: cat([points, view_dirs, normals, feats]) -> weight-normed
    MLP -> tanh, executed as one fused Pallas kernel tiled over rays."""
    if multires_view > 0:
        embed_fn, _ = get_embedder(multires_view)
        view_dirs = embed_fn(view_dirs)
    points = points.astype(jnp.float32)
    view_dirs = view_dirs.astype(jnp.float32)
    normals = normals.astype(jnp.float32)
    feature_vectors = feature_vectors.astype(jnp.float32)

    M = points.shape[0]
    d_in = (points.shape[1] + view_dirs.shape[1] + normals.shape[1]
            + feature_vectors.shape[1])
    d_out = params[-1]['v'].shape[1]

    # Padded layer widths: input/hidden dims rounded to 128 lanes; the final output dim
    # stays at d_out (rgb = 3) so writeback is 12 B/row and needs no post-kernel slice.
    dims = [d_in] + [p['v'].shape[1] for p in params]
    dims_pad = [_round_up(dims[0], LANE)]
    dims_pad += [_round_up(k, LANE) for k in dims[1:-1]]
    dims_pad.append(dims[-1])

    folded = _fold_weight_norm(params, dims_pad)
    num_layers = len(folded)

    # Row tiling: big tiles (<= 2048 rows) to amortize per-step overhead, but always
    # >= 2 grid steps when possible so both v7x TensorCores get work.
    tile = min(2048, max(8, _round_up(pl.cdiv(M, 2), 8)))
    n_steps = pl.cdiv(M, tile)          # partial last block handled by Pallas (OOB
                                        # reads unused, OOB writes dropped)

    in_specs = [
        pl.BlockSpec((tile, points.shape[1]), lambda i: (i, 0)),
        pl.BlockSpec((tile, view_dirs.shape[1]), lambda i: (i, 0)),
        pl.BlockSpec((tile, normals.shape[1]), lambda i: (i, 0)),
        pl.BlockSpec((tile, feature_vectors.shape[1]), lambda i: (i, 0)),
    ]
    args = [points, view_dirs, normals, feature_vectors]
    for w, b in folded:
        in_specs.append(pl.BlockSpec(w.shape, lambda i: (0, 0)))
        in_specs.append(pl.BlockSpec(b.shape, lambda i: (0, 0)))
        args += [w, b]

    out = pl.pallas_call(
        _make_render_kernel(num_layers, d_in, dims_pad[0]),
        grid=(n_steps,),
        in_specs=in_specs,
        out_specs=pl.BlockSpec((tile, d_out), lambda i: (i, 0)),
        out_shape=jax.ShapeDtypeStruct((M, d_out), jnp.float32),
        compiler_params=pltpu.CompilerParams(dimension_semantics=("parallel",)),
        interpret=interpret,
    )(*args)
    return out


# ------------------------------ pure-JAX reference ---------------------------
def rendering_forward_reference(params, points, normals, view_dirs, feature_vectors,
                                multires_view=0):
    if multires_view > 0:
        embed_fn, _ = get_embedder(multires_view)
        view_dirs = embed_fn(view_dirs)
    x = jnp.concatenate([points, view_dirs, normals, feature_vectors], axis=-1)
    n = len(params)
    for l, p in enumerate(params):
        v, g, b = p['v'], p['g'], p['b']
        w = g * v / jnp.sqrt(jnp.sum(v * v, axis=0, keepdims=True))
        x = x @ w + b
        if l < n - 1:
            x = jnp.maximum(x, 0.0)
    return jnp.tanh(x)


# ------------------------------ parameter init -------------------------------
def init_render_params(key, feature_vector_size, d_in, d_out, dims, multires_view=0):
    in_ch = d_in + feature_vector_size
    if multires_view > 0:
        _, input_ch = get_embedder(multires_view)
        in_ch += input_ch - 3
    layer_dims = [in_ch] + list(dims) + [d_out]
    params = []
    keys = jax.random.split(key, 2 * (len(layer_dims) - 1))
    for l in range(len(layer_dims) - 1):
        k_in, k_out = layer_dims[l], layer_dims[l + 1]
        bound = 1.0 / float(k_in) ** 0.5                       # nn.Linear default init
        v = jax.random.uniform(keys[2 * l], (k_in, k_out), jnp.float32, -bound, bound)
        b = jax.random.uniform(keys[2 * l + 1], (1, k_out), jnp.float32, -bound, bound)
        g = jnp.sqrt(jnp.sum(v * v, axis=0, keepdims=True))    # weight_norm init: w == v
        params.append({'v': v, 'g': g, 'b': b})
    return params


# ---------------------------------- main --------------------------------------
if __name__ == "__main__":
    FEATURE_VECTOR_SIZE = 32
    D_IN, D_OUT = 9, 3                      # points(3) + view_dirs(3) + normals(3) -> rgb(3)
    HIDDEN = (64, 64)
    B, N = 2, 64
    M = B * N

    key = jax.random.PRNGKey(0)
    kp, k1, k2, k3, k4 = jax.random.split(key, 5)
    params = init_render_params(kp, FEATURE_VECTOR_SIZE, D_IN, D_OUT, HIDDEN, multires_view=0)

    points = jax.random.normal(k1, (M, 3), jnp.float32)
    normals = jax.random.normal(k2, (M, 3), jnp.float32)
    normals = normals / jnp.linalg.norm(normals, axis=-1, keepdims=True)
    view_dirs = jax.random.normal(k3, (M, 3), jnp.float32)
    view_dirs = view_dirs / jnp.linalg.norm(view_dirs, axis=-1, keepdims=True)
    feature_vectors = jax.random.normal(k4, (M, FEATURE_VECTOR_SIZE), jnp.float32)

    fwd = jax.jit(functools.partial(rendering_forward, multires_view=0))
    rgb = fwd(params, points, normals, view_dirs, feature_vectors)
    jax.block_until_ready(rgb)

    ref = rendering_forward_reference(params, points, normals, view_dirs, feature_vectors)
    assert rgb.shape == (M, D_OUT)
    max_err = float(jnp.max(jnp.abs(rgb - ref)))
    assert max_err < 1e-3, f"kernel vs reference mismatch: {max_err}"
    print("KERNEL_OK")
</pallas_src>

<mosaic_0001>
module attributes {stable_mosaic.version = 11 : i64} {
  func.func @kernel(%arg0: i32, %arg1: memref<64x3xf32, #tpu.memory_space<vmem>>, %arg2: memref<64x3xf32, #tpu.memory_space<vmem>>, %arg3: memref<64x3xf32, #tpu.memory_space<vmem>>, %arg4: memref<64x32xf32, #tpu.memory_space<vmem>>, %arg5: memref<128x128xf32, #tpu.memory_space<vmem>>, %arg6: memref<1x128xf32, #tpu.memory_space<vmem>>, %arg7: memref<128x128xf32, #tpu.memory_space<vmem>>, %arg8: memref<1x128xf32, #tpu.memory_space<vmem>>, %arg9: memref<128x3xf32, #tpu.memory_space<vmem>>, %arg10: memref<1x3xf32, #tpu.memory_space<vmem>>, %arg11: memref<64x3xf32, #tpu.memory_space<vmem>>) attributes {dimension_semantics = [#tpu.dimension_semantics<parallel>], iteration_bounds = array<i64: 2>, scalar_prefetch = 0 : i64, scratch_operands = 0 : i64, tpu.core_type = #tpu.core_type<tc>, window_params = [{transform_indices = @transform_0, window_bounds = array<i64: 64, 3>}, {transform_indices = @transform_1, window_bounds = array<i64: 64, 3>}, {transform_indices = @transform_2, window_bounds = array<i64: 64, 3>}, {transform_indices = @transform_3, window_bounds = array<i64: 64, 32>}, {pipeline_mode = #tpu.pipeline_mode<synchronous>, transform_indices = @transform_4, window_bounds = array<i64: 128, 128>}, {pipeline_mode = #tpu.pipeline_mode<synchronous>, transform_indices = @transform_5, window_bounds = array<i64: 1, 128>}, {pipeline_mode = #tpu.pipeline_mode<synchronous>, transform_indices = @transform_6, window_bounds = array<i64: 128, 128>}, {pipeline_mode = #tpu.pipeline_mode<synchronous>, transform_indices = @transform_7, window_bounds = array<i64: 1, 128>}, {pipeline_mode = #tpu.pipeline_mode<synchronous>, transform_indices = @transform_8, window_bounds = array<i64: 128, 3>}, {pipeline_mode = #tpu.pipeline_mode<synchronous>, transform_indices = @transform_9, window_bounds = array<i64: 1, 3>}, {transform_indices = @transform_10, window_bounds = array<i64: 64, 3>}]} {
    %c0 = arith.constant 0 : index
    %c0_0 = arith.constant 0 : index
    %0 = vector.load %arg1[%c0, %c0_0] : memref<64x3xf32, #tpu.memory_space<vmem>>, vector<64x3xf32>
    %c0_1 = arith.constant 0 : index
    %c0_2 = arith.constant 0 : index
    %1 = vector.load %arg2[%c0_1, %c0_2] : memref<64x3xf32, #tpu.memory_space<vmem>>, vector<64x3xf32>
    %c0_3 = arith.constant 0 : index
    %c0_4 = arith.constant 0 : index
    %2 = vector.load %arg3[%c0_3, %c0_4] : memref<64x3xf32, #tpu.memory_space<vmem>>, vector<64x3xf32>
    %c0_5 = arith.constant 0 : index
    %c0_6 = arith.constant 0 : index
    %3 = vector.load %arg4[%c0_5, %c0_6] : memref<64x32xf32, #tpu.memory_space<vmem>>, vector<64x32xf32>
    %4 = tpu.concatenate %0, %1, %2, %3 in 1 : vector<64x3xf32>, vector<64x3xf32>, vector<64x3xf32>, vector<64x32xf32> -> vector<64x41xf32>
    %cst = arith.constant 0.000000e+00 : f32
    %5 = vector.broadcast %cst : f32 to vector<64x87xf32>
    %6 = tpu.concatenate %4, %5 in 1 : vector<64x41xf32>, vector<64x87xf32> -> vector<64x128xf32>
    %c0_7 = arith.constant 0 : index
    %c0_8 = arith.constant 0 : index
    %7 = vector.load %arg5[%c0_7, %c0_8] : memref<128x128xf32, #tpu.memory_space<vmem>>, vector<128x128xf32>
    %c0_9 = arith.constant 0 : index
    %c0_10 = arith.constant 0 : index
    %8 = vector.load %arg6[%c0_9, %c0_10] : memref<1x128xf32, #tpu.memory_space<vmem>>, vector<1x128xf32>
    %cst_11 = arith.constant dense<0.000000e+00> : vector<64x128xf32>
    %9 = tpu.matmul %6, %7, %cst_11 {dimension_numbers = #tpu.dot_dimension_numbers<[1], [0], [0], [1], [0, 0, 1, 1], [], []>} : vector<64x128xf32>, vector<128x128xf32>, vector<64x128xf32> -> vector<64x128xf32>
    %10 = vector.broadcast %8 : vector<1x128xf32> to vector<64x128xf32>
    %11 = arith.addf %9, %10 : vector<64x128xf32>
    %cst_12 = arith.constant 0.000000e+00 : f32
    %12 = vector.broadcast %cst_12 : f32 to vector<64x128xf32>
    %13 = arith.maximumf %11, %12 : vector<64x128xf32>
    %c0_13 = arith.constant 0 : index
    %c0_14 = arith.constant 0 : index
    %14 = vector.load %arg7[%c0_13, %c0_14] : memref<128x128xf32, #tpu.memory_space<vmem>>, vector<128x128xf32>
    %c0_15 = arith.constant 0 : index
    %c0_16 = arith.constant 0 : index
    %15 = vector.load %arg8[%c0_15, %c0_16] : memref<1x128xf32, #tpu.memory_space<vmem>>, vector<1x128xf32>
    %cst_17 = arith.constant dense<0.000000e+00> : vector<64x128xf32>
    %16 = tpu.matmul %13, %14, %cst_17 {dimension_numbers = #tpu.dot_dimension_numbers<[1], [0], [0], [1], [0, 0, 1, 1], [], []>} : vector<64x128xf32>, vector<128x128xf32>, vector<64x128xf32> -> vector<64x128xf32>
    %17 = vector.broadcast %15 : vector<1x128xf32> to vector<64x128xf32>
    %18 = arith.addf %16, %17 : vector<64x128xf32>
    %cst_18 = arith.constant 0.000000e+00 : f32
    %19 = vector.broadcast %cst_18 : f32 to vector<64x128xf32>
    %20 = arith.maximumf %18, %19 : vector<64x128xf32>
    %c0_19 = arith.constant 0 : index
    %c0_20 = arith.constant 0 : index
    %21 = vector.load %arg9[%c0_19, %c0_20] : memref<128x3xf32, #tpu.memory_space<vmem>>, vector<128x3xf32>
    %c0_21 = arith.constant 0 : index
    %c0_22 = arith.constant 0 : index
    %22 = vector.load %arg10[%c0_21, %c0_22] : memref<1x3xf32, #tpu.memory_space<vmem>>, vector<1x3xf32>
    %cst_23 = arith.constant dense<0.000000e+00> : vector<64x3xf32>
    %23 = tpu.matmul %20, %21, %cst_23 {dimension_numbers = #tpu.dot_dimension_numbers<[1], [0], [0], [1], [0, 0, 1, 1], [], []>} : vector<64x128xf32>, vector<128x3xf32>, vector<64x3xf32> -> vector<64x3xf32>
    %24 = vector.broadcast %22 : vector<1x3xf32> to vector<64x3xf32>
    %25 = arith.addf %23, %24 : vector<64x3xf32>
    %26 = math.tanh %25 : vector<64x3xf32>
    %c0_24 = arith.constant 0 : index
    %c0_25 = arith.constant 0 : index
    %27 = vector.load %arg11[%c0_24, %c0_25] : memref<64x3xf32, #tpu.memory_space<vmem>>, vector<64x3xf32>
    tpu.vector_store %arg11[%c0_24, %c0_25], %26 {strides = array<i32>} : memref<64x3xf32, #tpu.memory_space<vmem>>, vector<64x3xf32>,
    return
  }
  func.func @transform_0(%arg0: i32) -> (i32, i32) {
    %c0_i32 = arith.constant 0 : i32
    %c0_i32_0 = arith.constant 0 : i32
    return %arg0, %c0_i32 : i32, i32
  }
  func.func @transform_1(%arg0: i32) -> (i32, i32) {
    %c0_i32 = arith.constant 0 : i32
    %c0_i32_0 = arith.constant 0 : i32
    return %arg0, %c0_i32 : i32, i32
  }
  func.func @transform_2(%arg0: i32) -> (i32, i32) {
    %c0_i32 = arith.constant 0 : i32
    %c0_i32_0 = arith.constant 0 : i32
    return %arg0, %c0_i32 : i32, i32
  }
  func.func @transform_3(%arg0: i32) -> (i32, i32) {
    %c0_i32 = arith.constant 0 : i32
    %c0_i32_0 = arith.constant 0 : i32
    return %arg0, %c0_i32 : i32, i32
  }
  func.func @transform_4(%arg0: i32) -> (i32, i32) {
    %c0_i32 = arith.constant 0 : i32
    %c0_i32_0 = arith.constant 0 : i32
    %c0_i32_1 = arith.constant 0 : i32
    return %c0_i32, %c0_i32_0 : i32, i32
  }
  func.func @transform_5(%arg0: i32) -> (i32, i32) {
    %c0_i32 = arith.constant 0 : i32
    %c0_i32_0 = arith.constant 0 : i32
    %c0_i32_1 = arith.constant 0 : i32
    return %c0_i32, %c0_i32_0 : i32, i32
  }
  func.func @transform_6(%arg0: i32) -> (i32, i32) {
    %c0_i32 = arith.constant 0 : i32
    %c0_i32_0 = arith.constant 0 : i32
    %c0_i32_1 = arith.constant 0 : i32
    return %c0_i32, %c0_i32_0 : i32, i32
  }
  func.func @transform_7(%arg0: i32) -> (i32, i32) {
    %c0_i32 = arith.constant 0 : i32
    %c0_i32_0 = arith.constant 0 : i32
    %c0_i32_1 = arith.constant 0 : i32
    return %c0_i32, %c0_i32_0 : i32, i32
  }
  func.func @transform_8(%arg0: i32) -> (i32, i32) {
    %c0_i32 = arith.constant 0 : i32
    %c0_i32_0 = arith.constant 0 : i32
    %c0_i32_1 = arith.constant 0 : i32
    return %c0_i32, %c0_i32_0 : i32, i32
  }
  func.func @transform_9(%arg0: i32) -> (i32, i32) {
    %c0_i32 = arith.constant 0 : i32
    %c0_i32_0 = arith.constant 0 : i32
    %c0_i32_1 = arith.constant 0 : i32
    return %c0_i32, %c0_i32_0 : i32, i32
  }
  func.func @transform_10(%arg0: i32) -> (i32, i32) {
    %c0_i32 = arith.constant 0 : i32
    %c0_i32_0 = arith.constant 0 : i32
    return %arg0, %c0_i32 : i32, i32
  }
}

</mosaic_0001>

<bundles_post_ra>
// kernel: rendering_forward.1
= control target key start
LH: loop header
LB: loop body
LE: loop exit
PB: predicated region body
PF: predicated region fallthrough
CT: control target
= control target key end

     0   :  { %s1458_s13 = smov 0   ;;  %s1758_s0 = inlined_call_operand.vmem [shape: f32[128,3], index: 0, kind: input, shape index: {}]   ;;  %s1759_s1 = inlined_call_operand.vmem [shape: f32[128,3], index: 1, kind: input, shape index: {}]   ;;  %s1760_s2 = inlined_call_operand.vmem [shape: f32[128,3], index: 2, kind: input, shape index: {}]   ;;  %s1761_s3 = inlined_call_operand.vmem [shape: f32[128,32], index: 3, kind: input, shape index: {}]   ;;  %s1762_s4 = inlined_call_operand.vmem [shape: f32[128,128], index: 4, kind: input, shape index: {}]   ;;  %s1763_s5 = inlined_call_operand.vmem [shape: f32[1,128], index: 5, kind: input, shape index: {}]   ;;  %s1764_s6 = inlined_call_operand.vmem [shape: f32[128,128], index: 6, kind: input, shape index: {}]   ;;  %s1765_s7 = inlined_call_operand.vmem [shape: f32[1,128], index: 7, kind: input, shape index: {}]   ;;  %s1766_s8 = inlined_call_operand.vmem [shape: f32[128,3], index: 8, kind: input, shape index: {}]   ;;  %s1767_s9 = inlined_call_operand.vmem [shape: f32[1,3], index: 9, kind: input, shape index: {}]   ;;  %s1768_s10 = inlined_call_operand.vmem [shape: f32[128,3], index: 10, kind: output, shape index: {}]  }
   0x1 LB: > { %s1101_s14 = sadd.s32 4294967295, %s1398_s13   ;;  %p1105_p0 = scmp.ge.s32.totalorder %s1398_s13, 1  ;;  %s1398_s13 = sphi %s1458_s13, %s20_s13  }
   0x2   : > { %p346_p1 = scmp.lt.s32.totalorder %s1398_s13, 3 }
   0x4   : > { %p347_p2 = pnand %p1105_p0, %p346_p1 }
   0x5   : > { %s1106_s15 = sshll.u32 (!%p347_p2), %s1101_s14, 3  ;;  %s1400_s14 = smov (!%p347_p2), 6  }
   0x6   : > { %350 = sbr.rel (%p347_p2) target bundleno = 789 (0x315), region = 60  ;;  %p400_p3 = scmp.lt.s32.totalorder (!%p347_p2), %s1106_s15, 15 }
   0x7   : > { %s1401_s17 = smov (!%p347_p2), 3   ;;  %s1402_s29 = smov (!%p347_p2), 9  }
   0xb   : > { %v608_v0 = vld [vmem:[%s1762_s4 + $0x78] sm:$0xff]  ;;  %v607_v1 = vld [vmem:[%s1762_s4 + $0x70] sm:$0xff]  ;;  %v606_v2 = vld [vmem:[%s1762_s4 + $0x68] sm:$0xff]  ;;  %s1770_s15 = smov (!%p400_p3, %s1106_s15), 15  ;;  %vm557_vm0 = vcmask 23552   ;;  %vm566_vm1 = vcmask 48128  }
   0xc   : > { %1201 = vmatprep.subr.mxu0 %v608_v0  ;;  %v605_v3 = vld [vmem:[%s1762_s4 + $0x60] sm:$0xff]  ;;  %s1478_s24 = sshll.u32 %s1770_s15, 3  ;;  %v604_v4 = vld [vmem:[%s1762_s4 + $0x58] sm:$0xff]  ;;  %v603_v7 = vld [vmem:[%s1762_s4 + $0x50] sm:$0xff]  ;;  %vm575_vm2 = vcmask 72704   ;;  %vm584_vm3 = vcmask 334848  }
   0xd   : > { %1202 = vmatpush3.msra.mxu0 %v608_v0  ;;  %s1484_s27 = scalar_lea.vmem %s1760_s2, %s1478_s24  ;;  %s1494_s12 = scalar_lea.vmem %s1759_s1, %s1478_s24  ;;  %v602_v10 = vld [vmem:[%s1762_s4 + $0x48] sm:$0xff]  ;;  %v601_v11 = vld [vmem:[%s1762_s4 + $0x40] sm:$0xff]  ;;  %v600_v14 = vld [vmem:[%s1762_s4 + $0x38] sm:$0xff] }
   0xe   : > { %1203 = vmatprep.subr.mxu0 %v607_v1  ;;  %v445_v5 = vld [vmem:[%s1484_s27] sm:$0xff]  ;;  %v446_v8 = vld [vmem:[%s1484_s27 + $0x8] sm:$0xff]  ;;  %s1508_s20 = scalar_lea.vmem %s1761_s3, %s1478_s24  ;;  %v599_v15 = vld [vmem:[%s1762_s4 + $0x30] sm:$0xff]  ;;  %s1622_s25 = scalar_lea.vmem %s1758_s0, %s1478_s24 }
   0xf   : > { %1204 = vmatpush3.msra.mxu0 %v607_v1  ;;  %501 = vrot.lane.b32.xlu1 %v445_v5, %s1400_s14  ;;  %v437_v6 = vld [vmem:[%s1494_s12] sm:$0xff]  ;;  %v438_v9 = vld [vmem:[%s1494_s12 + $0x8] sm:$0xff]  ;;  %v440_v16 = vld [vmem:[%s1494_s12 + $0x18] sm:$0xff]  ;;  %s1737_s19 = scalar_lea.vmem %s1768_s10, %s1478_s24 }
  0x10   : > { %1205 = vmatprep.subr.mxu0 %v606_v2  ;;  %469 = vrot.lane.b32.xlu0 %v437_v6, %s1401_s17  ;;  %v454_v12 = vld [vmem:[%s1508_s20 + $0x8] sm:$0xff]  ;;  %v453_v13 = vld [vmem:[%s1508_s20] sm:$0xff]  ;;  %v439_v17 = vld [vmem:[%s1494_s12 + $0x10] sm:$0xff] }
  0x11   : > { %1206 = vmatpush3.msra.mxu0 %v606_v2  ;;  %v598_v18 = vld [vmem:[%s1762_s4 + $0x28] sm:$0xff]  ;;  %v597_v19 = vld [vmem:[%s1762_s4 + $0x20] sm:$0xff]  ;;  %v448_v20 = vld [vmem:[%s1484_s27 + $0x18] sm:$0xff] }
  0x12   : > { %1207 = vmatprep.subr.mxu0 %v605_v3  ;;  %v447_v21 = vld [vmem:[%s1484_s27 + $0x10] sm:$0xff]  ;;  %v596_v22 = vld [vmem:[%s1762_s4 + $0x18] sm:$0xff]  ;;  %v594_v26 = vld [vmem:[%s1762_s4 + $0x8] sm:$0xff] }
  0x13   : > { %1208 = vmatpush3.msra.mxu0 %v605_v3  ;;  %503 = vrot.lane.b32.xlu1 %v446_v8, %s1400_s14  ;;  %v595_v23 = vld [vmem:[%s1762_s4 + $0x10] sm:$0xff]  ;;  %v456_v24 = vld [vmem:[%s1508_s20 + $0x18] sm:$0xff]  ;;  %v593_v27 = vld [vmem:[%s1762_s4] sm:$0xff] }
  0x14   : > { %1209 = vmatprep.subr.mxu0 %v604_v4  ;;  %471 = vrot.lane.b32.xlu0 %v438_v9, %s1401_s17  ;;  %v455_v25 = vld [vmem:[%s1508_s20 + $0x10] sm:$0xff]  ;;  %v442_v28 = vld [vmem:[%s1494_s12 + $0x28] sm:$0xff]  ;;  %v441_v29 = vld [vmem:[%s1494_s12 + $0x20] sm:$0xff] }
  0x15   : > { %1210 = vmatpush3.msra.mxu0 %v604_v4  ;;  %v450_v30 = vld [vmem:[%s1484_s27 + $0x28] sm:$0xff]  ;;  %v449_v31 = vld [vmem:[%s1484_s27 + $0x20] sm:$0xff]  ;;  %v444_v34 = vld [vmem:[%s1494_s12 + $0x38] sm:$0xff] }
  0x16   : > { %1211 = vmatprep.subr.mxu0 %v603_v7  ;;  %v458_v32 = vld [vmem:[%s1508_s20 + $0x28] sm:$0xff]  ;;  %v457_v33 = vld [vmem:[%s1508_s20 + $0x20] sm:$0xff]  ;;  %v443_v35 = vld [vmem:[%s1494_s12 + $0x30] sm:$0xff] }
  0x17   : > { %1212 = vmatpush3.msra.mxu0 %v603_v7  ;;  %535 = vrot.lane.b32.xlu1 %v454_v12, %s1402_s29  ;;  %v744_v36 = vld [vmem:[%s1764_s6 + $0x78] sm:$0xff]  ;;  %v743_v37 = vld [vmem:[%s1764_s6 + $0x70] sm:$0xff]  ;;  %v742_v38 = vld [vmem:[%s1764_s6 + $0x68] sm:$0xff] }
  0x18   : > { %1213 = vmatprep.subr.mxu0 %v602_v10  ;;  %533 = vrot.lane.b32.xlu0 %v453_v13, %s1402_s29  ;;  %v452_v39 = vld [vmem:[%s1484_s27 + $0x38] sm:$0xff]  ;;  %v451_v40 = vld [vmem:[%s1484_s27 + $0x30] sm:$0xff]  ;;  %v741_v41 = vld [vmem:[%s1764_s6 + $0x60] sm:$0xff] }
  0x19   : > { %1214 = vmatpush3.msra.mxu0 %v602_v10  ;;  %1245 = vmatprep.subr.mxu1 %v744_v36  ;;  %v740_v42 = vld [vmem:[%s1764_s6 + $0x58] sm:$0xff]  ;;  %v459_v44 = vld [vmem:[%s1508_s20 + $0x30] sm:$0xff]  ;;  %v738_v46 = vld [vmem:[%s1764_s6 + $0x48] sm:$0xff] }
  0x1a   : > { %1215 = vmatprep.subr.mxu0 %v601_v11  ;;  %1246 = vmatpush3.msra.mxu1 %v744_v36  ;;  %v460_v43 = vld [vmem:[%s1508_s20 + $0x38] sm:$0xff]  ;;  %v739_v45 = vld [vmem:[%s1764_s6 + $0x50] sm:$0xff]  ;;  %v737_v47 = vld [vmem:[%s1764_s6 + $0x40] sm:$0xff] }
  0x1b   : > { %1216 = vmatpush3.msra.mxu0 %v601_v11  ;;  %475 = vrot.lane.b32.xlu1 %v440_v16, %s1401_s17  ;;  %v736_v48 = vld [vmem:[%s1764_s6 + $0x38] sm:$0xff]  ;;  %v735_v49 = vld [vmem:[%s1764_s6 + $0x30] sm:$0xff]  ;;  %v734_v50 = vld [vmem:[%s1764_s6 + $0x28] sm:$0xff] }
  0x1c   : > { %1217 = vmatprep.subr.mxu0 %v600_v14  ;;  %473 = vrot.lane.b32.xlu0 %v439_v17, %s1401_s17  ;;  %v733_v51 = vld [vmem:[%s1764_s6 + $0x20] sm:$0xff]  ;;  %v430_v55 = vld [vmem:[%s1622_s25 + $0x8] sm:$0xff]  ;;  %v432_v4 = vld [vmem:[%s1622_s25 + $0x18] sm:$0xff] }
  0x1d   : > { %1218 = vmatpush3.msra.mxu0 %v600_v14  ;;  %1247 = vmatprep.subr.mxu1 %v743_v37  ;;  %v429_v54 = vld [vmem:[%s1622_s25] sm:$0xff]  ;;  %v431_v6 = vld [vmem:[%s1622_s25 + $0x10] sm:$0xff] }
  0x1e   : > { %1219 = vmatprep.subr.mxu0 %v599_v15  ;;  %1248 = vmatpush3.msra.mxu1 %v743_v37 }
  0x1f   : > { %1220 = vmatpush3.msra.mxu0 %v599_v15  ;;  %507 = vrot.lane.b32.xlu1 %v448_v20, %s1400_s14  ;;  %v433_v20 = vld [vmem:[%s1622_s25 + $0x20] sm:$0xff] }
  0x20   : > { %1221 = vmatprep.subr.mxu0 %v598_v18  ;;  %505 = vrot.lane.b32.xlu0 %v447_v21, %s1400_s14 }
  0x21   : > { %1222 = vmatpush3.msra.mxu0 %v598_v18  ;;  %1249 = vmatprep.subr.mxu1 %v742_v38  ;;  %v434_v18 = vld [vmem:[%s1622_s25 + $0x28] sm:$0xff] }
  0x22   : > { %1223 = vmatprep.subr.mxu0 %v597_v19  ;;  %1250 = vmatpush3.msra.mxu1 %v742_v38 }
  0x23   : > { %1224 = vmatpush3.msra.mxu0 %v597_v19  ;;  %539 = vrot.lane.b32.xlu1 %v456_v24, %s1402_s29 }
  0x24   : > { %1225 = vmatprep.subr.mxu0 %v596_v22  ;;  %537 = vrot.lane.b32.xlu0 %v455_v25, %s1402_s29 }
  0x25   : > { %1226 = vmatpush3.msra.mxu0 %v596_v22  ;;  %1251 = vmatprep.subr.mxu1 %v741_v41 }
  0x26   : > { %1227 = vmatprep.subr.mxu0 %v595_v23  ;;  %1252 = vmatpush3.msra.mxu1 %v741_v41 }
  0x27   : > { %1228 = vmatpush3.msra.mxu0 %v595_v23  ;;  %479 = vrot.lane.b32.xlu1 %v442_v28, %s1401_s17 }
  0x28   : > { %1229 = vmatprep.subr.mxu0 %v594_v26  ;;  %477 = vrot.lane.b32.xlu0 %v441_v29, %s1401_s17 }
  0x29   : > { %1230 = vmatpush3.msra.mxu0 %v594_v26  ;;  %1253 = vmatprep.subr.mxu1 %v740_v42 }
  0x2a   : > { %1231 = vmatprep.subr.mxu0 %v593_v27  ;;  %1254 = vmatpush3.msra.mxu1 %v740_v42 }
  0x2b   : > { %1232 = vmatpush3.msra.mxu0 %v593_v27  ;;  %511 = vrot.lane.b32.xlu1 %v450_v30, %s1400_s14 }
  0x2c   : > { %509 = vrot.lane.b32.xlu0 %v449_v31, %s1400_s14  ;;  %1255 = vmatprep.subr.mxu1 %v739_v45 }
  0x2d   : > { %1256 = vmatpush3.msra.mxu1 %v739_v45  ;;  %v731_v45 = vld [vmem:[%s1764_s6 + $0x10] sm:$0xff] }
  0x2e   : > { %1257 = vmatprep.subr.mxu1 %v738_v46 }
  0x2f   : > { %543 = vrot.lane.b32.xlu1 %v458_v32, %s1402_s29  ;;  %1258 = vmatpush3.msra.mxu1 %v738_v46  ;;  %v436_v32 = vld [vmem:[%s1622_s25 + $0x38] sm:$0xff]  ;;  %v730_v46 = vld [vmem:[%s1764_s6 + $0x8] sm:$0xff] }
  0x30   : > { %541 = vrot.lane.b32.xlu0 %v457_v33, %s1402_s29  ;;  %1259 = vmatprep.subr.mxu1 %v737_v47 }
  0x31   : > { %1260 = vmatpush3.msra.mxu1 %v737_v47  ;;  %v729_v47 = vld [vmem:[%s1764_s6] sm:$0xff] }
  0x32   : > { %1261 = vmatprep.subr.mxu1 %v736_v48 }
  0x33   : > { %483 = vrot.lane.b32.xlu1 %v444_v34, %s1401_s17  ;;  %1262 = vmatpush3.msra.mxu1 %v736_v48  ;;  %v435_v34 = vld [vmem:[%s1622_s25 + $0x30] sm:$0xff]  ;;  %v880_v48 = vld [vmem:[%s1766_s8 + $0x78] sm:$0xff] }
  0x34   : > { %481 = vrot.lane.b32.xlu0 %v443_v35, %s1401_s17  ;;  %1263 = vmatprep.subr.mxu1 %v735_v49 }
  0x35   : > { %1264 = vmatpush3.msra.mxu1 %v735_v49  ;;  %v879_v49 = vld [vmem:[%s1766_s8 + $0x70] sm:$0xff]  ;;  %1289 = vmatprep.subr.mxu0 %v880_v48 }
  0x36   : > { %1265 = vmatprep.subr.mxu1 %v734_v50 }
  0x37   : > { %515 = vrot.lane.b32.xlu1 %v452_v39, %s1400_s14  ;;  %1266 = vmatpush3.msra.mxu1 %v734_v50  ;;  %v878_v50 = vld [vmem:[%s1766_s8 + $0x68] sm:$0xff] }
  0x38   : > { %513 = vrot.lane.b32.xlu0 %v451_v40, %s1400_s14  ;;  %1267 = vmatprep.subr.mxu1 %v733_v51 }
  0x39   : > { %1268 = vmatpush3.msra.mxu1 %v733_v51  ;;  %v877_v51 = vld [vmem:[%s1766_s8 + $0x60] sm:$0xff] }
  0x3b   : > { %547 = vrot.lane.b32.xlu1 %v460_v43, %s1402_s29 }
  0x3c   : > { %545 = vrot.lane.b32.xlu0 %v459_v44, %s1402_s29  ;;  %v732_v44 = vld [vmem:[%s1764_s6 + $0x18] sm:$0xff] }
  0x3d   : > { %1269 = vmatprep.subr.mxu1 %v732_v44 }
  0x3e   : > { %1270 = vmatpush3.msra.mxu1 %v732_v44 }
  0x3f   : > { %1271 = vmatprep.subr.mxu1 %v731_v45 }
  0x40   : > { %1272 = vmatpush3.msra.mxu1 %v731_v45 }
  0x41   : > { %1273 = vmatprep.subr.mxu1 %v730_v46 }
  0x42   : > { %1274 = vmatpush3.msra.mxu1 %v730_v46 }
  0x43   : > { %1275 = vmatprep.subr.mxu1 %v729_v47 }
  0x44   : > { %1276 = vmatpush3.msra.mxu1 %v729_v47 }
  0x45   : > { %1333 = vmatprep.subr.mxu1 %v880_v48 }
  0x81   : > { %v502_v52 = vpop.permute.xlu1 %501 }
  0x82   : > { %v470_v53 = vpop.permute.xlu0 %469 }
  0x83   : > { %v558_v58 = vsel %vm557_vm0, %v429_v54, %v470_v53  ;;  %v875_v53 = vld [vmem:[%s1766_s8 + $0x50] sm:$0xff]  ;;  %v874_v54 = vld [vmem:[%s1766_s8 + $0x48] sm:$0xff] }
  0x84   : > { %v567_v0 = vsel %vm566_vm1, %v558_v58, %v502_v52  ;;  %v876_v52 = vld [vmem:[%s1766_s8 + $0x58] sm:$0xff]  ;;  %v870_v58 = vld [vmem:[%s1766_s8 + $0x28] sm:$0xff] }
  0x85   : > { %v504_v56 = vpop.permute.xlu1 %503 }
  0x86   : > { %v472_v57 = vpop.permute.xlu0 %471 }
  0x87   : > { %v559_v59 = vsel %vm557_vm0, %v430_v55, %v472_v57  ;;  %v873_v55 = vld [vmem:[%s1766_s8 + $0x40] sm:$0xff]  ;;  %v871_v57 = vld [vmem:[%s1766_s8 + $0x30] sm:$0xff] }
  0x88   : > { %v568_v61 = vsel %vm566_vm1, %v559_v59, %v504_v56  ;;  %v872_v56 = vld [vmem:[%s1766_s8 + $0x38] sm:$0xff]  ;;  %v869_v59 = vld [vmem:[%s1766_s8 + $0x20] sm:$0xff] }
  0x89   : > { %v536_v60 = vpop.permute.xlu1 %535 }
  0x8a   : > { %v577_v62 = vsel %vm575_vm2, %v568_v61, %v536_v60  ;;  %v534_v63 = vpop.permute.xlu0 %533  ;;  %v1116_v60 = vld [vmem:[%s1763_s5] ss:$0 sm:$0xff] }
  0x8b   : > { %v576_v1 = vsel %vm575_vm2, %v567_v0, %v534_v63 }
  0x8c   : > { %1233 = vmatprep.mubr.msk.f32.mxu0 %vm584_vm3, %v576_v1 }
  0x8d   : > { %1234 = vmatmul.mubr.msk.f32.vlgmr.msra.gmra.mxu0 %vm584_vm3, %v577_v62  ;;  %v476_v2 = vpop.permute.xlu1 %475 }
  0x8e   : > { %v474_v3 = vpop.permute.xlu0 %473  ;;  %v561_v8 = vsel %vm557_vm0, %v432_v4, %v476_v2  ;;  %1290 = vmatpush3.msra.mxu0 %v880_v48 }
  0x8f   : > { %v560_v9 = vsel %vm557_vm0, %v431_v6, %v474_v3  ;;  %1291 = vmatprep.subr.mxu0 %v879_v49 }
  0x90   : > { %1292 = vmatpush3.msra.mxu0 %v879_v49 }
  0x91   : > { %v508_v5 = vpop.permute.xlu1 %507  ;;  %1293 = vmatprep.subr.mxu0 %v878_v50 }
  0x92   : > { %v506_v7 = vpop.permute.xlu0 %505  ;;  %v570_v10 = vsel %vm566_vm1, %v561_v8, %v508_v5  ;;  %1294 = vmatpush3.msra.mxu0 %v878_v50 }
  0x93   : > { %v569_v12 = vsel %vm566_vm1, %v560_v9, %v506_v7  ;;  %1295 = vmatprep.subr.mxu0 %v877_v51 }
  0x94   : > { %1296 = vmatpush3.msra.mxu0 %v877_v51 }
  0x95   : > { %v540_v11 = vpop.permute.xlu1 %539  ;;  %1297 = vmatprep.subr.mxu0 %v876_v52 }
  0x96   : > { %v579_v13 = vsel %vm575_vm2, %v570_v10, %v540_v11  ;;  %v538_v14 = vpop.permute.xlu0 %537  ;;  %1298 = vmatpush3.msra.mxu0 %v876_v52 }
  0x97   : > { %v578_v15 = vsel %vm575_vm2, %v569_v12, %v538_v14  ;;  %1299 = vmatprep.subr.mxu0 %v875_v53 }
  0x98   : > { %1236 = vmatprep.mubr.msk.f32.mxu0 %vm584_vm3, %v578_v15  ;;  %1300 = vmatpush3.msra.mxu0 %v875_v53 }
  0x99   : > { %1237 = vmatmul.mubr.msk.f32.gmra.mxu0 %vm584_vm3, %v579_v13  ;;  %v480_v16 = vpop.permute.xlu1 %479  ;;  %1301 = vmatprep.subr.mxu0 %v874_v54 }
  0x9a   : > { %v478_v17 = vpop.permute.xlu0 %477  ;;  %v563_v22 = vsel %vm557_vm0, %v434_v18, %v480_v16  ;;  %1302 = vmatpush3.msra.mxu0 %v874_v54 }
  0x9b   : > { %v562_v23 = vsel %vm557_vm0, %v433_v20, %v478_v17  ;;  %1303 = vmatprep.subr.mxu0 %v873_v55 }
  0x9c   : > { %1304 = vmatpush3.msra.mxu0 %v873_v55 }
  0x9d   : > { %v512_v19 = vpop.permute.xlu1 %511  ;;  %1305 = vmatprep.subr.mxu0 %v872_v56 }
  0x9e   : > { %v510_v21 = vpop.permute.xlu0 %509  ;;  %v572_v24 = vsel %vm566_vm1, %v563_v22, %v512_v19  ;;  %1306 = vmatpush3.msra.mxu0 %v872_v56  ;;  %v867_v22 = vld [vmem:[%s1766_s8 + $0x10] sm:$0xff] }
  0x9f   : > { %v571_v26 = vsel %vm566_vm1, %v562_v23, %v510_v21  ;;  %1307 = vmatprep.subr.mxu0 %v871_v57  ;;  %v868_v21 = vld [vmem:[%s1766_s8 + $0x18] sm:$0xff]  ;;  %v866_v23 = vld [vmem:[%s1766_s8 + $0x8] sm:$0xff] }
  0xa0   : > { %1308 = vmatpush3.msra.mxu0 %v871_v57 }
  0xa1   : > { %v544_v25 = vpop.permute.xlu1 %543  ;;  %1309 = vmatprep.subr.mxu0 %v870_v58 }
  0xa2   : > { %v581_v27 = vsel %vm575_vm2, %v572_v24, %v544_v25  ;;  %v542_v28 = vpop.permute.xlu0 %541  ;;  %1310 = vmatpush3.msra.mxu0 %v870_v58  ;;  %v865_v24 = vld [vmem:[%s1766_s8] sm:$0xff] }
  0xa3   : > { %v580_v29 = vsel %vm575_vm2, %v571_v26, %v542_v28  ;;  %1311 = vmatprep.subr.mxu0 %v869_v59  ;;  %v1125_v25 = vld [vmem:[%s1765_s7] ss:$0 sm:$0xff] }
  0xa4   : > { %1239 = vmatprep.mubr.msk.f32.mxu0 %vm584_vm3, %v580_v29  ;;  %1312 = vmatpush3.msra.mxu0 %v869_v59 }
  0xa5   : > { %1240 = vmatmul.mubr.msk.f32.gmra.mxu0 %vm584_vm3, %v581_v27  ;;  %v484_v30 = vpop.permute.xlu1 %483  ;;  %1313 = vmatprep.subr.mxu0 %v868_v21 }
  0xa6   : > { %v482_v31 = vpop.permute.xlu0 %481  ;;  %v565_v36 = vsel %vm557_vm0, %v436_v32, %v484_v30  ;;  %1314 = vmatpush3.msra.mxu0 %v868_v21 }
  0xa7   : > { %v564_v37 = vsel %vm557_vm0, %v435_v34, %v482_v31  ;;  %1315 = vmatprep.subr.mxu0 %v867_v22 }
  0xa8   : > { %1316 = vmatpush3.msra.mxu0 %v867_v22 }
  0xa9   : > { %v516_v33 = vpop.permute.xlu1 %515  ;;  %1317 = vmatprep.subr.mxu0 %v866_v23 }
  0xaa   : > { %v514_v35 = vpop.permute.xlu0 %513  ;;  %v574_v38 = vsel %vm566_vm1, %v565_v36, %v516_v33  ;;  %1318 = vmatpush3.msra.mxu0 %v866_v23 }
  0xab   : > { %v573_v40 = vsel %vm566_vm1, %v564_v37, %v514_v35  ;;  %1319 = vmatprep.subr.mxu0 %v865_v24 }
  0xac   : > { %1320 = vmatpush3.msra.mxu0 %v865_v24 }
  0xad   : > { %v548_v39 = vpop.permute.xlu1 %547 }
  0xae   : > { %v583_v41 = vsel %vm575_vm2, %v574_v38, %v548_v39  ;;  %v546_v42 = vpop.permute.xlu0 %545 }
  0xaf   : > { %v582_v43 = vsel %vm575_vm2, %v573_v40, %v546_v42 }
  0xb0   : > { %1242 = vmatprep.mubr.msk.f32.mxu0 %vm584_vm3, %v582_v43 }
  0xb1   : > { %1243 = vmatmul.mubr.msk.f32.gmra.mxu0 %vm584_vm3, %v583_v41 }
 0x14d   : > { %v1235_v61 = vpop.f32.mrf.mxu0 }
 0x14e   : > { %v688_v62 = vadd.f32 %v1235_v61, %v1116_v60 }
 0x14f   : > { %v682_v63 = vpop.f32.mrf.mxu0 }
 0x150   : > { %v683_v0 = vadd.f32 %v1116_v60, %v682_v63  ;;  %v722_v2 = vmax.f32 %v688_v62, 0.0 }
 0x152   : > { %v721_v1 = vmax.f32 %v683_v0, 0.0 }
 0x154   : > { %1277 = vmatprep.mubr.f32.mxu1 %v721_v1 }
 0x155   : > { %1278 = vmatmul.mubr.f32.vlgmr.msra.gmra.mxu1 %v722_v2 }
 0x156   : > { %1349 = vmatpush3.msra.mxu1 %v880_v48 }
 0x157   : > { %1334 = vmatprep.subr.mxu1 %v879_v49 }
 0x158   : > { %1350 = vmatpush3.msra.mxu1 %v879_v49 }
 0x159   : > { %v1238_v3 = vpop.f32.mrf.mxu0  ;;  %1335 = vmatprep.subr.mxu1 %v878_v50 }
 0x15a   : > { %1351 = vmatpush3.msra.mxu1 %v878_v50  ;;  %v698_v4 = vadd.f32 %v1238_v3, %v1116_v60  ;;  %v1126_v50 = vld [vmem:[%s1767_s9] ss:$0 sm:$0xff] }
 0x15b   : > { %v692_v5 = vpop.f32.mrf.mxu0  ;;  %1336 = vmatprep.subr.mxu1 %v877_v51 }
 0x15c   : > { %v693_v6 = vadd.f32 %v1116_v60, %v692_v5  ;;  %1352 = vmatpush3.msra.mxu1 %v877_v51  ;;  %v724_v8 = vmax.f32 %v698_v4, 0.0 }
 0x15d   : > { %1337 = vmatprep.subr.mxu1 %v876_v52 }
 0x15e   : > { %v723_v7 = vmax.f32 %v693_v6, 0.0  ;;  %1353 = vmatpush3.msra.mxu1 %v876_v52 }
 0x15f   : > { %1338 = vmatprep.subr.mxu1 %v875_v53 }
 0x160   : > { %1280 = vmatprep.mubr.f32.mxu1 %v723_v7  ;;  %1354 = vmatpush3.msra.mxu1 %v875_v53 }
 0x161   : > { %1281 = vmatmul.mubr.f32.gmra.mxu1 %v724_v8  ;;  %1339 = vmatprep.subr.mxu1 %v874_v54 }
 0x162   : > { %1355 = vmatpush3.msra.mxu1 %v874_v54 }
 0x163   : > { %1340 = vmatprep.subr.mxu1 %v873_v55 }
 0x164   : > { %1356 = vmatpush3.msra.mxu1 %v873_v55 }
 0x165   : > { %v1241_v9 = vpop.f32.mrf.mxu0  ;;  %1341 = vmatprep.subr.mxu1 %v872_v56 }
 0x166   : > { %1357 = vmatpush3.msra.mxu1 %v872_v56  ;;  %v708_v10 = vadd.f32 %v1241_v9, %v1116_v60 }
 0x167   : > { %v702_v11 = vpop.f32.mrf.mxu0  ;;  %1342 = vmatprep.subr.mxu1 %v871_v57 }
 0x168   : > { %v703_v12 = vadd.f32 %v1116_v60, %v702_v11  ;;  %1358 = vmatpush3.msra.mxu1 %v871_v57  ;;  %v726_v14 = vmax.f32 %v708_v10, 0.0 }
 0x169   : > { %1343 = vmatprep.subr.mxu1 %v870_v58 }
 0x16a   : > { %v725_v13 = vmax.f32 %v703_v12, 0.0  ;;  %1359 = vmatpush3.msra.mxu1 %v870_v58 }
 0x16b   : > { %1344 = vmatprep.subr.mxu1 %v869_v59 }
 0x16c   : > { %1283 = vmatprep.mubr.f32.mxu1 %v725_v13  ;;  %1360 = vmatpush3.msra.mxu1 %v869_v59 }
 0x16d   : > { %1284 = vmatmul.mubr.f32.gmra.mxu1 %v726_v14  ;;  %1345 = vmatprep.subr.mxu1 %v868_v21 }
 0x16e   : > { %1361 = vmatpush3.msra.mxu1 %v868_v21 }
 0x16f   : > { %1346 = vmatprep.subr.mxu1 %v867_v22 }
 0x170   : > { %1362 = vmatpush3.msra.mxu1 %v867_v22 }
 0x171   : > { %v1244_v15 = vpop.f32.mrf.mxu0  ;;  %1347 = vmatprep.subr.mxu1 %v866_v23 }
 0x172   : > { %v718_v16 = vadd.f32 %v1244_v15, %v1116_v60  ;;  %1363 = vmatpush3.msra.mxu1 %v866_v23 }
 0x173   : > { %v712_v17 = vpop.f32.mrf.mxu0  ;;  %1348 = vmatprep.subr.mxu1 %v865_v24 }
 0x174   : > { %v713_v18 = vadd.f32 %v1116_v60, %v712_v17  ;;  %v728_v20 = vmax.f32 %v718_v16, 0.0  ;;  %1364 = vmatpush3.msra.mxu1 %v865_v24 }
 0x176   : > { %v727_v19 = vmax.f32 %v713_v18, 0.0 }
 0x178   : > { %1286 = vmatprep.mubr.f32.mxu1 %v727_v19 }
 0x179   : > { %1287 = vmatmul.mubr.f32.gmra.mxu1 %v728_v20 }
 0x215   : > { %v1279_v26 = vpop.f32.mrf.mxu1 }
 0x216   : > { %v824_v27 = vadd.f32 %v1279_v26, %v1125_v25 }
 0x217   : > { %v818_v28 = vpop.f32.mrf.mxu1 }
 0x218   : > { %v819_v29 = vadd.f32 %v1125_v25, %v818_v28  ;;  %v858_v31 = vmax.f32 %v824_v27, 0.0 }
 0x21a   : > { %v857_v30 = vmax.f32 %v819_v29, 0.0 }
 0x21c   : > { %1321 = vmatprep.mubr.f32.mxu0 %v857_v30 }
 0x21d   : > { %1322 = vmatmul.mubr.f32.vlgmr.msra.gmra.mxu0 %v858_v31 }
 0x221   : > { %v1282_v32 = vpop.f32.mrf.mxu1 }
 0x222   : > { %v834_v33 = vadd.f32 %v1282_v32, %v1125_v25 }
 0x223   : > { %v828_v34 = vpop.f32.mrf.mxu1 }
 0x224   : > { %v829_v35 = vadd.f32 %v1125_v25, %v828_v34  ;;  %v860_v37 = vmax.f32 %v834_v33, 0.0 }
 0x226   : > { %v859_v36 = vmax.f32 %v829_v35, 0.0 }
 0x228   : > { %1324 = vmatprep.mubr.f32.mxu0 %v859_v36 }
 0x229   : > { %1325 = vmatmul.mubr.f32.gmra.mxu0 %v860_v37 }
 0x22d   : > { %v1285_v38 = vpop.f32.mrf.mxu1 }
 0x22e   : > { %v844_v39 = vadd.f32 %v1285_v38, %v1125_v25 }
 0x22f   : > { %v838_v40 = vpop.f32.mrf.mxu1 }
 0x230   : > { %v839_v41 = vadd.f32 %v1125_v25, %v838_v40  ;;  %v862_v43 = vmax.f32 %v844_v39, 0.0 }
 0x232   : > { %v861_v42 = vmax.f32 %v839_v41, 0.0 }
 0x234   : > { %1327 = vmatprep.mubr.f32.mxu1 %v861_v42 }
 0x235   : > { %1328 = vmatmul.mubr.f32.vlgmr.msra.gmra.mxu1 %v862_v43 }
 0x239   : > { %v1288_v44 = vpop.f32.mrf.mxu1 }
 0x23a   : > { %v854_v45 = vadd.f32 %v1288_v44, %v1125_v25 }
 0x23b   : > { %v848_v46 = vpop.f32.mrf.mxu1 }
 0x23c   : > { %v849_v47 = vadd.f32 %v1125_v25, %v848_v46  ;;  %v864_v49 = vmax.f32 %v854_v45, 0.0 }
 0x23e   : > { %v863_v48 = vmax.f32 %v849_v47, 0.0 }
 0x240   : > { %1330 = vmatprep.mubr.f32.mxu1 %v863_v48 }
 0x241   : > { %1331 = vmatmul.mubr.f32.gmra.mxu1 %v864_v49 }
 0x2dd   : > { %v1323_v51 = vpop.f32.mrf.mxu0 }
 0x2de   : > { %v960_v52 = vadd.f32 %v1323_v51, %v1126_v50 }
 0x2df   : > { %v954_v53 = vpop.f32.mrf.mxu0 }
 0x2e0   : > { %1376 = vtanh.f32 %v960_v52  ;;  %v955_v54 = vadd.f32 %v1126_v50, %v954_v53 }
 0x2e2   : > { %1378 = vtanh.f32 %v955_v54 }
 0x2e9   : > { %v1326_v55 = vpop.f32.mrf.mxu0 }
 0x2ea   : > { %v970_v56 = vadd.f32 %v1326_v55, %v1126_v50 }
 0x2eb   : > { %v964_v57 = vpop.f32.mrf.mxu0 }
 0x2ec   : > { %1380 = vtanh.f32 %v970_v56  ;;  %v965_v58 = vadd.f32 %v1126_v50, %v964_v57 }
 0x2ed   : > { %v1377_v59 = vpop.eup %1376 }
 0x2ee   : > { %1002 = vst.msk [vmem:[%s1737_s19 + $0x8] sm:$0xff] %vm557_vm0, %v1377_v59  ;;  %1382 = vtanh.f32 %v965_v58 }
 0x2ef   : > { %v1379_v60 = vpop.eup %1378 }
 0x2f0   : > { %1001 = vst.msk [vmem:[%s1737_s19] sm:$0xff] %vm557_vm0, %v1379_v60 }
 0x2f5   : > { %v1329_v61 = vpop.f32.mrf.mxu1 }
 0x2f6   : > { %v980_v62 = vadd.f32 %v1329_v61, %v1126_v50 }
 0x2f7   : > { %v974_v63 = vpop.f32.mrf.mxu1 }
 0x2f8   : > { %1384 = vtanh.f32 %v980_v62  ;;  %v975_v0 = vadd.f32 %v1126_v50, %v974_v63 }
 0x2f9   : > { %v1381_v1 = vpop.eup %1380 }
 0x2fa   : > { %1004 = vst.msk [vmem:[%s1737_s19 + $0x18] sm:$0xff] %vm557_vm0, %v1381_v1  ;;  %1386 = vtanh.f32 %v975_v0 }
 0x2fb   : > { %v1383_v2 = vpop.eup %1382 }
 0x2fc   : > { %1003 = vst.msk [vmem:[%s1737_s19 + $0x10] sm:$0xff] %vm557_vm0, %v1383_v2 }
 0x301   : > { %v1332_v3 = vpop.f32.mrf.mxu1 }
 0x302   : > { %v990_v4 = vadd.f32 %v1332_v3, %v1126_v50 }
 0x303   : > { %v984_v5 = vpop.f32.mrf.mxu1 }
 0x304   : > { %1388 = vtanh.f32 %v990_v4  ;;  %v985_v6 = vadd.f32 %v1126_v50, %v984_v5 }
 0x305   : > { %v1385_v7 = vpop.eup %1384 }
 0x306   : > { %1006 = vst.msk [vmem:[%s1737_s19 + $0x28] sm:$0xff] %vm557_vm0, %v1385_v7  ;;  %1390 = vtanh.f32 %v985_v6 }
 0x307   : > { %v1387_v8 = vpop.eup %1386 }
 0x308   : > { %1005 = vst.msk [vmem:[%s1737_s19 + $0x20] sm:$0xff] %vm557_vm0, %v1387_v8 }
 0x311   : > { %v1389_v9 = vpop.eup %1388 }
 0x312   : > { %1008 = vst.msk [vmem:[%s1737_s19 + $0x38] sm:$0xff] %vm557_vm0, %v1389_v9 }
 0x313   : > { %v1391_v10 = vpop.eup %1390 }
 0x314   : > { %1007 = vst.msk [vmem:[%s1737_s19 + $0x30] sm:$0xff] %vm557_vm0, %v1391_v10 }
 0x315 PF: > { %s20_s13 = sadd.s32 1, %s1398_s13  }
 0x316   : > { %p17_p4 = scmp.ge.s32.totalorder %s20_s13, 4  }
 0x318   :  { %19 = sbr.rel (!%p17_p4) target bundleno = 1 (0x1), region = 99 }

</bundles_post_ra>
